<compile_context>
chip_gen: v7x
topology: tpu7x:2x2x1
jax: 0.10.0
libtpu: 0.0.40
codegen_flags: <defaults>
</compile_context>

<pallas_src>
import math

import jax
import jax.numpy as jnp
from jax import lax
from jax.experimental import pallas as pl
from jax.experimental.pallas import tpu as pltpu

# torch.finfo(float32).eps (nn.RMSNorm default when eps=None; inputs here are f32).
# TODO(synk): if the module runs natively in bf16, PyTorch would use bf16 eps (~7.8e-3).
EPS = 1.1920929e-07


def _round_up(x, m):
    return -(-x // m) * m


# ---------------------------------------------------------------------------
# One-time parameter prep (at init, NOT per forward): pad projection weights'
# output dim to a lane multiple (128) and pre-cast MXU weight operands to bf16.
# ---------------------------------------------------------------------------
def prepare_params(params, *, compute_dtype=jnp.bfloat16):
    def prep_w(w):
        n = w.shape[1]
        n_pad = _round_up(n, 128)
        if n_pad != n:
            w = jnp.pad(w, ((0, 0), (0, n_pad - n)))
        if w.dtype == jnp.float32:
            w = w.astype(compute_dtype)
        return w

    out = dict(params)
    out["w_qkv"] = prep_w(params["w_qkv"])
    out["w_out"] = prep_w(params["w_out"])
    pm = params["persistent_memory"]
    out["persistent_memory"] = pm.astype(compute_dtype) if pm.dtype == jnp.float32 else pm
    return out


# ---------------------------------------------------------------------------
# Kernels 1 & 3: (optionally RMSNorm-fused) projection with VMEM-resident weight
# ---------------------------------------------------------------------------
def _rms_qkv_kernel(x_ref, g_ref, w_ref, o_ref):
    x = x_ref[...].astype(jnp.float32)                       # norm statistics in f32
    g = g_ref[...].astype(jnp.float32)
    ms = jnp.mean(x * x, axis=-1, keepdims=True)
    xn = (x * lax.rsqrt(ms + EPS) * g).astype(w_ref.dtype)   # bf16 MXU operand
    o_ref[...] = jnp.dot(xn, w_ref[...],
                         preferred_element_type=jnp.float32).astype(o_ref.dtype)


def _proj_kernel(x_ref, w_ref, o_ref):
    o_ref[...] = jnp.dot(x_ref[...].astype(w_ref.dtype), w_ref[...],
                         preferred_element_type=jnp.float32).astype(o_ref.dtype)


def _linear(x, w, g=None, *, tile_m=512, tile_n=1024,
            resident_weight_budget=40 * 1024 * 1024):
    """out = (RMSNorm(x)*g if g is not None else x) @ w.

    `w` must already have a lane-multiple output dim (padded once in prepare_params).
    Default path keeps `w` fully resident in VMEM (1-D grid over M): x and w each
    stream from HBM exactly once and the norm is computed once per row tile.
    """
    M, K = x.shape
    N = w.shape[1]
    assert N % 128 == 0
    out_dtype = x.dtype

    tile_m = int(min(tile_m, _round_up(M, 8)))
    M_pad = _round_up(M, tile_m)
    if M_pad != M:
        x = jnp.pad(x, ((0, M_pad - M), (0, 0)))

    kernel = _rms_qkv_kernel if g is not None else _proj_kernel
    w_bytes = w.size * w.dtype.itemsize

    if w_bytes <= resident_weight_budget:
        grid = (M_pad // tile_m,)
        x_spec = pl.BlockSpec((tile_m, K), lambda i: (i, 0))
        w_spec = pl.BlockSpec((K, N), lambda i: (0, 0))       # resident: never re-DMA'd
        o_spec = pl.BlockSpec((tile_m, N), lambda i: (i, 0))
        g_specs = [pl.BlockSpec((1, K), lambda i: (0, 0))] if g is not None else []
        semantics = ("parallel",)
        need = (2 * w_bytes
                + 4 * tile_m * K * x.dtype.itemsize
                + 4 * tile_m * N * jnp.dtype(out_dtype).itemsize)
        vmem_limit = int(min(128 * 1024 * 1024, max(need + (4 << 20), 32 << 20)))
    else:
        # Weight too large to keep resident: N-outer / M-inner grid so each weight
        # column block streams from HBM exactly once.
        # TODO(synk): v7x (64 MiB VMEM) huge-dim path — add K tiling with an f32
        # VMEM accumulator and a per-chip vmem budget; this fallback re-reads x
        # (and recomputes RMSNorm stats) once per N tile.
        tile_n = min(int(tile_n), N)
        tile_n = (tile_n // 128) * 128
        while N % tile_n:
            tile_n -= 128
        grid = (N // tile_n, M_pad // tile_m)
        x_spec = pl.BlockSpec((tile_m, K), lambda j, i: (i, 0))
        w_spec = pl.BlockSpec((K, tile_n), lambda j, i: (0, j))
        o_spec = pl.BlockSpec((tile_m, tile_n), lambda j, i: (i, j))
        g_specs = [pl.BlockSpec((1, K), lambda j, i: (0, 0))] if g is not None else []
        semantics = ("parallel", "parallel")
        vmem_limit = None

    in_specs = [x_spec] + g_specs + [w_spec]
    args = [x] + ([g] if g is not None else []) + [w]

    out = pl.pallas_call(
        kernel,
        out_shape=jax.ShapeDtypeStruct((M_pad, N), out_dtype),
        grid_spec=pltpu.PrefetchScalarGridSpec(
            num_scalar_prefetch=0,
            grid=grid,
            in_specs=in_specs,
            out_specs=o_spec,
        ),
        compiler_params=pltpu.CompilerParams(
            dimension_semantics=semantics,
            vmem_limit_bytes=vmem_limit),
    )(*args)
    return out[:M]


# ---------------------------------------------------------------------------
# Kernel 2: per-segment attention, all heads fused, rotary + persistent memory
#           in-kernel, merged-heads lane-dense output.
# ---------------------------------------------------------------------------
def _make_segment_attn_kernel(heads, dim_head, num_persist, scale, mxu_dtype):
    d = dim_head
    di = heads * dim_head
    p = num_persist

    def kernel(qkv_ref, cos_ref, sin_ref, *rest):
        if p > 0:
            pmk_ref, pmv_ref, o_ref = rest
        else:
            (o_ref,) = rest

        n = qkv_ref.shape[0]

        # rotary tables tiled once to the full merged-head lane width (hoisted)
        cos = jnp.tile(cos_ref[...].astype(jnp.float32), (1, heads))   # (n, di)
        sin = jnp.tile(sin_ref[...].astype(jnp.float32), (1, heads))
        even = (lax.broadcasted_iota(jnp.int32, (n, di), 1) % 2) == 0

        qi = lax.broadcasted_iota(jnp.int32, (n, n), 0)
        ki = lax.broadcasted_iota(jnp.int32, (n, n), 1)
        causal = ki <= qi                                 # block-diagonal causal mask

        def rope(x):
            # Whole-slab interleaved-pair rotation via XLU rolls.
            # left[j] = x[j+1], right[j] = x[j-1]; cross-head / slab wrap elements land
            # only on parities discarded by the even/odd select (dh is even).
            left = pltpu.roll(x, di - 1, 1)
            right = pltpu.roll(x, 1, 1)
            return x * cos + jnp.where(even, -left, right) * sin

        # rope once per slab; fold the softmax scale into q (not into n^2 logits)
        q_all = (rope(qkv_ref[:, :di].astype(jnp.float32)) * scale).astype(mxu_dtype)
        k_all = rope(qkv_ref[:, di:2 * di].astype(jnp.float32)).astype(mxu_dtype)
        v_all = qkv_ref[:, 2 * di:3 * di].astype(mxu_dtype)

        contract_last = (((1,), (1,)), ((), ()))          # q . k^T without transposing k
        outs = []
        # TODO(synk): for dim_head >= 64 pack head pairs to 128 lanes / batch the
        # per-head dots; for total_segment_len >= ~256 (v7x VMEM) switch to an
        # online-softmax row tiling.
        for h in range(heads):                            # static, unrolled; heads fused
            sl = slice(h * d, (h + 1) * d)
            q = q_all[:, sl]
            k = k_all[:, sl]
            v = v_all[:, sl]

            s = lax.dot_general(q, k, contract_last,
                                preferred_element_type=jnp.float32)    # (n, n)
            s = jnp.where(causal, s, -1e30)

            if p > 0:
                # persistent keys: not rotated, always visible; kept as a separate
                # (n, p) block — no lane-misaligned concat / re-slice.
                pmk = pmk_ref[h].astype(mxu_dtype)
                s_pm = lax.dot_general(q, pmk, contract_last,
                                       preferred_element_type=jnp.float32)  # (n, p)
                m = jnp.maximum(jnp.max(s, axis=-1, keepdims=True),
                                jnp.max(s_pm, axis=-1, keepdims=True))
                e = jnp.exp(s - m)
                e_pm = jnp.exp(s_pm - m)
                denom = (jnp.sum(e, axis=-1, keepdims=True)
                         + jnp.sum(e_pm, axis=-1, keepdims=True))
                o_h = jnp.dot(e.astype(mxu_dtype), v,
                              preferred_element_type=jnp.float32)
                o_h = o_h + jnp.dot(e_pm.astype(mxu_dtype), pmv_ref[h].astype(mxu_dtype),
                                    preferred_element_type=jnp.float32)
            else:
                m = jnp.max(s, axis=-1, keepdims=True)
                e = jnp.exp(s - m)
                denom = jnp.sum(e, axis=-1, keepdims=True)
                o_h = jnp.dot(e.astype(mxu_dtype), v,
                              preferred_element_type=jnp.float32)

            o_h = o_h * pl.reciprocal(denom, approx=True)
            outs.append(o_h.astype(o_ref.dtype))          # eager down-cast: halve live bytes

        # merged-heads, lane-dense (n, heads*dim_head) store
        o_ref[...] = jnp.concatenate(outs, axis=-1)

    return kernel


def segment_attention(qkv_seg, cos, sin, pmk, pmv, *, heads, dim_head,
                      num_persist_mem_tokens, compute_dtype=jnp.bfloat16):
    B, W, total, three_di = qkv_seg.shape
    dim_inner = heads * dim_head
    p = num_persist_mem_tokens
    scale = 1.0 / math.sqrt(dim_head)
    mxu_dtype = compute_dtype if qkv_seg.dtype == jnp.float32 else qkv_seg.dtype
    sq = pl.Squeezed()
    kernel = _make_segment_attn_kernel(heads, dim_head, p, scale, mxu_dtype)

    in_specs = [
        pl.BlockSpec((sq, sq, total, three_di), lambda b, w: (b, w, 0, 0)),
        pl.BlockSpec((sq, total, dim_head), lambda b, w: (w, 0, 0)),
        pl.BlockSpec((sq, total, dim_head), lambda b, w: (w, 0, 0)),
    ]
    args = [qkv_seg, cos, sin]
    if p > 0:
        # tiny persistent-memory K/V stay resident (constant index map)
        pm_spec = pl.BlockSpec((heads, p, dim_head), lambda b, w: (0, 0, 0))
        in_specs += [pm_spec, pm_spec]
        args += [pmk, pmv]

    # TODO(synk): if total <= ~128 and B*W is large, process several segments per
    # grid step to amortize the ~0.35 us per-step overhead.
    return pl.pallas_call(
        kernel,
        out_shape=jax.ShapeDtypeStruct((B, W, total, dim_inner), qkv_seg.dtype),
        grid_spec=pltpu.PrefetchScalarGridSpec(
            num_scalar_prefetch=0,
            grid=(B, W),
            in_specs=in_specs,
            out_specs=pl.BlockSpec((sq, sq, total, dim_inner),
                                   lambda b, w: (b, w, 0, 0)),
        ),
        compiler_params=pltpu.CompilerParams(
            dimension_semantics=("parallel", "parallel")),
    )(*args)


# ---------------------------------------------------------------------------
# Forward pass glue (JAX-level work limited to free reshapes, the rotary tables,
# and the auxiliary cache/value-residual transposes required by the return API).
# ---------------------------------------------------------------------------
def segmented_attention_forward(seq, params, *, segment_len, num_longterm_mem_tokens,
                                num_persist_mem_tokens, heads, dim_head):
    B, L, dim = seq.shape
    dim_inner = heads * dim_head
    total = segment_len + num_longterm_mem_tokens
    W = pl.cdiv(L, total)
    L_pad = W * total
    pad = L_pad - L
    x = jnp.pad(seq, ((0, 0), (0, pad), (0, 0))) if pad > 0 else seq

    # [K1] RMSNorm + QKV projection (resident weight, bf16 MXU operands)
    qkv = _linear(x.reshape(B * L_pad, dim), params["w_qkv"],
                  g=params["rms_g"].reshape(1, dim))
    qkv = qkv[:, :3 * dim_inner]   # drop lane padding (no-op when 3*dim_inner % 128 == 0)

    # auxiliary outputs (pre-rotary k/v in 'b h n d' layout, as the module returns)
    qkv5 = qkv.reshape(B, L_pad, 3, heads, dim_head)
    orig_v = jnp.transpose(qkv5[:, :, 2], (0, 2, 1, 3))            # (B, H, L_pad, dh)
    k_cache = jnp.transpose(qkv5[:, :, 1], (0, 2, 1, 3))[:, :, :L]
    v_cache = orig_v[:, :, :L]
    # TODO(synk): learned value-residual mix (accept_value_residual=True) and
    # output_gating are not implemented; default module config leaves both disabled.

    # rotary cos/sin tables over absolute padded positions (interleaved pairs, theta=1e4)
    assert dim_head % 2 == 0
    inv_freq = 1.0 / (10000.0 ** (jnp.arange(0, dim_head, 2, dtype=jnp.float32) / dim_head))
    t = jnp.arange(L_pad, dtype=jnp.float32)
    freqs = jnp.repeat(t[:, None] * inv_freq[None, :], 2, axis=-1)  # (L_pad, dh)
    cos = jnp.cos(freqs).reshape(W, total, dim_head)
    sin = jnp.sin(freqs).reshape(W, total, dim_head)

    # fold segments into batch for free: pure contiguous reshape, no transpose
    qkv_seg = qkv.reshape(B, W, total, 3 * dim_inner)

    # [K2] per-segment attention (heads fused, rope/scale/persistent memory in-kernel)
    attn = segment_attention(
        qkv_seg, cos, sin,
        params["persistent_memory"][0], params["persistent_memory"][1],
        heads=heads, dim_head=dim_head,
        num_persist_mem_tokens=num_persist_mem_tokens)              # (B, W, total, di)

    # [K3] output projection; '(b w) n d -> b (w n) d' is again a free reshape
    out = _linear(attn.reshape(B * L_pad, dim_inner), params["w_out"])
    out = out[:, :dim].reshape(B, L_pad, dim)[:, :L]
    return out, (orig_v, (k_cache, v_cache))


if __name__ == "__main__":
    key = jax.random.PRNGKey(0)
    B, L, dim = 2, 13, 32
    heads, dim_head = 4, 16
    segment_len = 8
    num_longterm_mem_tokens = 0
    num_persist_mem_tokens = 4
    dim_inner = heads * dim_head

    ks = jax.random.split(key, 4)
    seq = jax.random.normal(ks[0], (B, L, dim), dtype=jnp.float32)
    raw_params = {
        "rms_g": jnp.ones((dim,), jnp.float32),
        "w_qkv": jax.random.normal(ks[1], (dim, dim_inner * 3), jnp.float32) / math.sqrt(dim),
        "w_out": jax.random.normal(ks[2], (dim_inner, dim), jnp.float32) / math.sqrt(dim_inner),
        # module __init__ zero-inits this; small random values keep the path non-trivial
        "persistent_memory": 0.02 * jax.random.normal(
            ks[3], (2, heads, num_persist_mem_tokens, dim_head), jnp.float32),
    }
    params = prepare_params(raw_params)   # one-time weight pad / bf16 cast (not per forward)

    out, (orig_v, (k_cache, v_cache)) = segmented_attention_forward(
        seq, params,
        segment_len=segment_len,
        num_longterm_mem_tokens=num_longterm_mem_tokens,
        num_persist_mem_tokens=num_persist_mem_tokens,
        heads=heads, dim_head=dim_head)

    jax.block_until_ready(out)
    assert out.shape == (B, L, dim)
    assert orig_v.shape == (B, heads, 16, dim_head)        # padded length
    assert k_cache.shape == (B, heads, L, dim_head)
    assert v_cache.shape == (B, heads, L, dim_head)
    print("KERNEL_OK")
</pallas_src>

<mosaic_0001>
module attributes {stable_mosaic.version = 11 : i64} {
  func.func @_rms_qkv_kernel(%arg0: i32, %arg1: memref<32x32xf32, #tpu.memory_space<vmem>>, %arg2: memref<1x32xf32, #tpu.memory_space<vmem>>, %arg3: memref<32x256xbf16, #tpu.memory_space<vmem>>, %arg4: memref<32x256xf32, #tpu.memory_space<vmem>>) attributes {dimension_semantics = [#tpu.dimension_semantics<parallel>], iteration_bounds = array<i64: 1>, scalar_prefetch = 0 : i64, scratch_operands = 0 : i64, tpu.core_type = #tpu.core_type<tc>, window_params = [{transform_indices = @transform_0, window_bounds = array<i64: 32, 32>}, {pipeline_mode = #tpu.pipeline_mode<synchronous>, transform_indices = @transform_1, window_bounds = array<i64: 1, 32>}, {pipeline_mode = #tpu.pipeline_mode<synchronous>, transform_indices = @transform_2, window_bounds = array<i64: 32, 256>}, {transform_indices = @transform_3, window_bounds = array<i64: 32, 256>}]} {
    %c0 = arith.constant 0 : index
    %c0_0 = arith.constant 0 : index
    %0 = vector.load %arg1[%c0, %c0_0] : memref<32x32xf32, #tpu.memory_space<vmem>>, vector<32x32xf32>
    %c0_1 = arith.constant 0 : index
    %c0_2 = arith.constant 0 : index
    %1 = vector.load %arg2[%c0_1, %c0_2] : memref<1x32xf32, #tpu.memory_space<vmem>>, vector<1x32xf32>
    %2 = arith.mulf %0, %0 : vector<32x32xf32>
    %cst = arith.constant dense<0.000000e+00> : vector<32xf32>
    %3 = vector.multi_reduction <add>, %2, %cst [1] : vector<32x32xf32> to vector<32xf32>
    %4 = vector.shape_cast %3 : vector<32xf32> to vector<32x1xf32>
    %cst_3 = arith.constant 3.200000e+01 : f32
    %5 = vector.broadcast %cst_3 : f32 to vector<32x1xf32>
    %6 = arith.divf %4, %5 : vector<32x1xf32>
    %cst_4 = arith.constant 1.1920929E-7 : f32
    %7 = vector.broadcast %cst_4 : f32 to vector<32x1xf32>
    %8 = arith.addf %6, %7 : vector<32x1xf32>
    %9 = math.rsqrt %8 : vector<32x1xf32>
    %10 = vector.broadcast %9 : vector<32x1xf32> to vector<32x32xf32>
    %11 = arith.mulf %0, %10 : vector<32x32xf32>
    %12 = vector.broadcast %1 : vector<1x32xf32> to vector<32x32xf32>
    %13 = arith.mulf %11, %12 : vector<32x32xf32>
    %14 = arith.truncf %13 : vector<32x32xf32> to vector<32x32xbf16>
    %c0_5 = arith.constant 0 : index
    %c0_6 = arith.constant 0 : index
    %15 = vector.load %arg3[%c0_5, %c0_6] : memref<32x256xbf16, #tpu.memory_space<vmem>>, vector<32x256xbf16>
    %cst_7 = arith.constant dense<0.000000e+00> : vector<32x256xf32>
    %16 = tpu.matmul %14, %15, %cst_7 {dimension_numbers = #tpu.dot_dimension_numbers<[1], [0], [0], [1], [0, 0, 1, 1], [], []>} : vector<32x32xbf16>, vector<32x256xbf16>, vector<32x256xf32> -> vector<32x256xf32>
    %c0_8 = arith.constant 0 : index
    %c0_9 = arith.constant 0 : index
    %17 = vector.load %arg4[%c0_8, %c0_9] : memref<32x256xf32, #tpu.memory_space<vmem>>, vector<32x256xf32>
    tpu.vector_store %arg4[%c0_8, %c0_9], %16 {strides = array<i32>} : memref<32x256xf32, #tpu.memory_space<vmem>>, vector<32x256xf32>,
    return
  }
  func.func @transform_0(%arg0: i32) -> (i32, i32) {
    %c0_i32 = arith.constant 0 : i32
    %c0_i32_0 = arith.constant 0 : i32
    return %arg0, %c0_i32 : i32, i32
  }
  func.func @transform_1(%arg0: i32) -> (i32, i32) {
    %c0_i32 = arith.constant 0 : i32
    %c0_i32_0 = arith.constant 0 : i32
    %c0_i32_1 = arith.constant 0 : i32
    return %c0_i32, %c0_i32_0 : i32, i32
  }
  func.func @transform_2(%arg0: i32) -> (i32, i32) {
    %c0_i32 = arith.constant 0 : i32
    %c0_i32_0 = arith.constant 0 : i32
    %c0_i32_1 = arith.constant 0 : i32
    return %c0_i32, %c0_i32_0 : i32, i32
  }
  func.func @transform_3(%arg0: i32) -> (i32, i32) {
    %c0_i32 = arith.constant 0 : i32
    %c0_i32_0 = arith.constant 0 : i32
    return %arg0, %c0_i32 : i32, i32
  }
}

</mosaic_0001>

<bundles_post_ra>
// kernel: tpu_custom_call.1
= control target key start
LH: loop header
LB: loop body
LE: loop exit
PB: predicated region body
PF: predicated region fallthrough
CT: control target
= control target key end

     0   :  { %8 = vsyncpa [#allocation3], 0  ;;  %s382_s0 = inlined_call_operand.hbm [shape: f32[32,32], index: 0, kind: input, shape index: {}]   ;;  %s383_s1 = inlined_call_operand.vmem [shape: f32[1,32], index: 1, kind: input, shape index: {}]   ;;  %s384_s2 = inlined_call_operand.hbm [shape: bf16[32,256], index: 2, kind: input, shape index: {}]   ;;  %s385_s3 = inlined_call_operand.hbm [shape: f32[32,256], index: 3, kind: output, shape index: {}]  }
   0x1   :  { %9 = vsyncpa [#allocation6], 0 }
   0x2   :  { %10 = vsyncpa [#allocation4], 0  ;;  %s309_s12 = smov [#allocation2]   ;;  %s237_s16 = scalar_lea.hbm %s382_s0, 512 }
   0x3   :  { %s16_s13 = sshll.u32 %s309_s12, 4  ;;  %p238_p0 = scmp.ne.s32.totalorder %s382_s0, %s237_s16  ;;  %s17_s13 = int_to_ptr.vmem [resolvable:$true] %s16_s13 }
   0x4   :  { %p241_p1 = scmp.lt.u32.totalorder %s237_s16, %s382_s0 }
   0x6   :  { %p243_p2 = pnand %p241_p1, %p238_p0 }
   0x8   :  { %246 = shalt.err (!%p243_p2)
}
   0x9   :  { %s247_s21 = scalar_lea.vmem %s17_s13, 512  ;;  %p252_p4 = scmp.lt.s32.totalorder %s17_s13, %s17_s13 }
   0xa   :  { %p248_p3 = scmp.ne.s32.totalorder %s17_s13, %s247_s21  ;;  %p253_p5 = scmp.lt.s32.totalorder %s247_s21, %s247_s21 }
   0xc   :  { %p254_p6 = por %p253_p5, %p252_p4 }
   0xe   :  { %p255_p7 = pnand %p254_p6, %p248_p3 }
  0x10   :  { %258 = shalt.err (!%p255_p7)
}
  0x11   :  { %s310_s22 = smov 128   ;;  %s311_s23 = smov 8  }
  0x12   :  { %22 = dma.hbm_to_vmem [thread:$0]  %s382_s0, 512, %s17_s13, [#allocation3], %s310_s22, %s310_s22, %s311_s23  }
  0x13   :  { %s312_s26 = smov [#allocation5]   ;;  %s259_s30 = scalar_lea.hbm %s384_s2, 512 }
  0x14   :  { %s30_s27 = sshll.u32 %s312_s26, 4  ;;  %p260_p8 = scmp.ne.s32.totalorder %s384_s2, %s259_s30  ;;  %s31_s27 = int_to_ptr.vmem [resolvable:$true] %s30_s27 }
  0x15   :  { %p263_p9 = scmp.lt.u32.totalorder %s259_s30, %s384_s2 }
  0x17   :  { %p265_p10 = pnand %p263_p9, %p260_p8 }
  0x19   :  { %268 = shalt.err (!%p265_p10)
}
  0x1a   :  { %s269_s8 = scalar_lea.vmem %s31_s27, 512  ;;  %p274_p12 = scmp.lt.s32.totalorder %s31_s27, %s31_s27 }
  0x1b   :  { %p270_p11 = scmp.ne.s32.totalorder %s31_s27, %s269_s8  ;;  %p275_p13 = scmp.lt.s32.totalorder %s269_s8, %s269_s8 }
  0x1d   :  { %p276_p0 = por %p275_p13, %p274_p12 }
  0x1f   :  { %p277_p1 = pnand %p276_p0, %p270_p11 }
  0x21   :  { %280 = shalt.err (!%p277_p1)
}
  0x22   :  { %36 = dma.hbm_to_vmem [thread:$0]  %s384_s2, 512, %s31_s27, [#allocation6], %s310_s22, %s310_s22, %s311_s23  }
  0x23   :  { %303 = dma.done.wait [#allocation3], 512  }
  0x24   :  { %304 = vsyncadd [#allocation3], 4294966784 }
  0x25   :  { %305 = dma.done.wait [#allocation6], 512  }
  0x26   :  { %306 = vsyncadd [#allocation6], 4294966784  ;;  %v46_v0 = vld [vmem:[#allocation2 + $0x10] sm:$0xff]  ;;  %vm53_vm0 = vcmask 261120   ;;  %v44_v1 = vld [vmem:[#allocation2] sm:$0xff]  ;;  %v313_v16 = vmov 0  }
  0x27   :  { %v47_v2 = vld [vmem:[#allocation2 + $0x18] sm:$0xff]  ;;  %v51_v3 = vmul.f32 %v46_v0, %v46_v0  ;;  %v49_v4 = vmul.f32 %v44_v1, %v44_v1  ;;  %v45_v6 = vld [vmem:[#allocation2 + $0x8] sm:$0xff]  ;;  %157 = vmatprep.mubr.bf16.mxu0 %v313_v16  ;;  %167 = vmatprep.mubr.bf16.mxu1 %v313_v16  ;;  %v204_v33 = vld [vmem:[%s383_s1] ss:$0 sm:$0xff]  ;;  %s314_s11 = smov [#allocation7]  }
  0x28   :  { %v52_v5 = vmul.f32 %v47_v2, %v47_v2  ;;  %v50_v7 = vmul.f32 %v45_v6, %v45_v6  ;;  %v223_v12 = vld [vmem:[#allocation5 + $0x4] ss:$8 sps:$4 sm:$0xff]   ;;  %v225_v13 = vld [vmem:[#allocation5] ss:$8 sps:$4 sm:$0xff]   ;;  %v226_v14 = vld [vmem:[#allocation5 + $0x14] ss:$8 sps:$4 sm:$0xff]  }
  0x29   :  { %v60_v8 = vsel %vm53_vm0, %v51_v3, 0.0  ;;  %v54_v9 = vsel %vm53_vm0, %v49_v4, 0.0  ;;  %125 = vmatprep.subr.bf16.mxu0 %v223_v12  ;;  %211 = vmatprep.subr.bf16.mxu1 %v223_v12  ;;  %v228_v15 = vld [vmem:[#allocation5 + $0x10] ss:$8 sps:$4 sm:$0xff]   ;;  %s191_s12 = sshll.u32 %s314_s11, 4  ;;  %s192_s12 = int_to_ptr.vmem [resolvable:$true] %s191_s12 }
  0x2a   :  { %61 = vadd.xlane.f32.xlu1 %v60_v8  ;;  %55 = vadd.xlane.f32.xlu0 %v54_v9  ;;  %v63_v10 = vsel %vm53_vm0, %v52_v5, 0.0  ;;  %v57_v11 = vsel %vm53_vm0, %v50_v7, 0.0  ;;  %s281_s1 = scalar_lea.vmem %s192_s12, 1024  ;;  %p286_p3 = scmp.lt.s32.totalorder %s192_s12, %s192_s12 }
  0x2b   :  { %126 = vmatpush1.bf16.msra.mxu0 %v225_v13  ;;  %213 = vmatpush1.bf16.msra.mxu1 %v225_v13  ;;  %p282_p2 = scmp.ne.s32.totalorder %s192_s12, %s281_s1  ;;  %p287_p4 = scmp.lt.s32.totalorder %s281_s1, %s281_s1 }
  0x2c   :  { %127 = vmatprep.subr.bf16.mxu0 %v226_v14  ;;  %212 = vmatprep.subr.bf16.mxu1 %v226_v14 }
  0x2d   :  { %p288_p5 = por %p287_p4, %p286_p3 }
  0x2e   :  { %64 = vadd.xlane.f32.xlu1 %v63_v10  ;;  %58 = vadd.xlane.f32.xlu0 %v57_v11 }
  0x2f   :  { %128 = vmatpush1.bf16.msra.mxu0 %v228_v15  ;;  %214 = vmatpush1.bf16.msra.mxu1 %v228_v15  ;;  %p289_p6 = pnand %p288_p5, %p282_p2 }
  0xb7   :  { %v62_v17 = vpop.xlane.xlu1 %61  ;;  %v56_v18 = vpop.xlane.xlu0 %55 }
  0xb8   :  { %v69_v19 = vmul.f32 0.03125, %v62_v17  ;;  %v67_v20 = vmul.f32 0.03125, %v56_v18 }
  0xba   :  { %v73_v21 = vadd.f32 1.1920929e-07, %v69_v19  ;;  %v71_v22 = vadd.f32 1.1920929e-07, %v67_v20 }
  0xbb   :  { %v65_v23 = vpop.xlane.xlu1 %64  ;;  %v59_v24 = vpop.xlane.xlu0 %58 }
  0xbc   :  { %229 = vrsqrt.f32 %v73_v21  ;;  %v70_v25 = vmul.f32 0.03125, %v65_v23  ;;  %v68_v26 = vmul.f32 0.03125, %v59_v24 }
  0xbd   :  { %231 = vrsqrt.f32 %v71_v22 }
  0xbe   :  { %v74_v27 = vadd.f32 1.1920929e-07, %v70_v25  ;;  %v72_v28 = vadd.f32 1.1920929e-07, %v68_v26 }
  0xc0   :  { %233 = vrsqrt.f32 %v74_v27 }
  0xc1   :  { %235 = vrsqrt.f32 %v72_v28 }
  0xc6   :  { %v230_v29 = vpop.eup %229 }
  0xc7   :  { %v232_v30 = vpop.eup %231  ;;  %v81_v31 = vmul.f32 %v230_v29, %v46_v0 }
  0xc8   :  { %v79_v34 = vmul.f32 %v232_v30, %v44_v1 }
  0xc9   :  { %v91_v38 = vmul.f32 %v204_v33, %v81_v31 }
  0xca   :  { %v234_v32 = vpop.eup %233  ;;  %v89_v40 = vmul.f32 %v204_v33, %v79_v34 }
  0xcb   :  { %v236_v35 = vpop.eup %235  ;;  %v82_v36 = vmul.f32 %v234_v32, %v47_v2 }
  0xcc   :  { %v80_v37 = vmul.f32 %v236_v35, %v45_v6 }
  0xcd   :  { %v92_v39 = vmul.f32 %v204_v33, %v82_v36 }
  0xce   :  { %v90_v41 = vmul.f32 %v204_v33, %v80_v37 }
  0xcf   :  { %v94_v42 = vpack.c.bf16 %v92_v39, %v91_v38 }
  0xd0   :  { %v93_v43 = vpack.c.bf16 %v90_v41, %v89_v40 }
  0xd1   :  { %210 = vmatmul.mubr.msk.bf16.vlgmr.msra.gmra.mrb[0].mxu1 %vm53_vm0, %v94_v42 }
  0xd2   :  { %209 = vmatmul.mubr.msk.bf16.vlgmr.msra.gmra.mrb[0].mxu0 %vm53_vm0, %v93_v43 }
 0x1a4   :  { %v169_v44 = vpop.f32.mrb[0].mxu1 }
 0x1a5   :  { %v159_v45 = vpop.f32.mrb[0].mxu0  ;;  %182 = vst [vmem:[#allocation7 + $0x20] sm:$0xff] %v169_v44  ;;  %v171_v46 = vpop.f32.mrb[1].mxu1 }
 0x1a6   :  { %178 = vst [vmem:[#allocation7] sm:$0xff] %v159_v45  ;;  %v161_v47 = vpop.f32.mrb[1].mxu0  ;;  %183 = vst [vmem:[#allocation7 + $0x28] sm:$0xff] %v171_v46  ;;  %v173_v48 = vpop.f32.mrb[2].mxu1 }
 0x1a7   :  { %179 = vst [vmem:[#allocation7 + $0x8] sm:$0xff] %v161_v47  ;;  %v163_v49 = vpop.f32.mrb[2].mxu0  ;;  %184 = vst [vmem:[#allocation7 + $0x30] sm:$0xff] %v173_v48  ;;  %v175_v50 = vpop.f32.mrb[3].mxu1 }
 0x1a8   :  { %180 = vst [vmem:[#allocation7 + $0x10] sm:$0xff] %v163_v49  ;;  %v165_v51 = vpop.f32.mrb[3].mxu0  ;;  %185 = vst [vmem:[#allocation7 + $0x38] sm:$0xff] %v175_v50 }
 0x1a9   :  { %181 = vst [vmem:[#allocation7 + $0x18] sm:$0xff] %v165_v51 }
 0x1aa   :  { %292 = shalt.err (!%p289_p6)
}
 0x1ab   :  { %s293_s15 = scalar_lea.hbm %s385_s3, 1024 }
 0x1ac   :  { %p294_p7 = scmp.ne.s32.totalorder %s385_s3, %s293_s15  ;;  %p297_p8 = scmp.lt.u32.totalorder %s293_s15, %s385_s3 }
 0x1ae   :  { %p299_p9 = pnand %p297_p8, %p294_p7 }
 0x1b0   :  { %302 = shalt.err (!%p299_p9)
}
 0x1b1   :  { %s315_s20 = smov 256   ;;  %s316_s21 = smov 16  }
 0x1b2   :  { %197 = dma.vmem_to_hbm [thread:$0]  %s192_s12, 1024, %s385_s3, [#allocation4], %s315_s20, %s315_s20, %s316_s21  }
 0x1b3   :  { %307 = dma.done.wait [#allocation4], 1024  }
 0x1b4   :  { %308 = vsyncadd [#allocation4], 4294966272 }
 0x1b5   :  { %201 = vsyncpa [#allocation3], 1 }
 0x1b6   :  { %202 = vsyncpa [#allocation6], 1 }
 0x1b7   :  { %203 = vsyncpa [#allocation4], 1 }

</bundles_post_ra>
